<compile_context>
chip_gen: v7x
topology: tpu7x:2x2x1
jax: 0.10.0
libtpu: 0.0.40
codegen_flags: <defaults>
</compile_context>

<pallas_src>
import functools
import math

import jax
import jax.numpy as jnp
from jax import lax
from jax.experimental import pallas as pl
from jax.experimental.pallas import tpu as pltpu

INF = 1e9

# ----------------------------- config (synthetic) ---------------------------
N_ITER = 2
D_MODEL = 32          # coarse feature dim (block_dims[2] stand-in)
TEMPERATURE = 0.1     # match_coarse.dsmax_temperature
PATCH = 8             # coarse stride (1/8 resolution)

# L-tile cap for the tiled fallback: ~256 keeps the f32 (TL, S) working set
# (+ double buffering) inside every generation's VMEM (incl. v7x's 64 MiB) at
# LoFTR-scale S≈4800.
L_TILE_CAP = 256

# Use the fused single-pass kernel when its per-step VMEM working set
# (features + double-buffered out + sim/e_r/e_c temporaries) stays well under
# the 16 MiB default scoped-VMEM limit.
FUSED_VMEM_BUDGET = 10 * 1024 * 1024


def _pick_l_tile(l, cap=L_TILE_CAP):
    if l <= cap:
        return l
    for t in range(cap, 7, -8):          # largest multiple-of-8 divisor <= cap
        if l % t == 0:
            return t
    return l


def _maybe_vmem_limit(per_step_bytes):
    # Only raise the scoped-VMEM limit when tiles actually need it; stay well
    # under v7x's 64 MiB physical VMEM.  At the synthetic sizes this is None.
    if per_step_bytes <= 12 * 1024 * 1024:
        return None
    return min(int(2.5 * per_step_bytes) + (4 << 20), 56 << 20)


# ============================ Pallas kernels ================================

def _patch_embed_pe_kernel(x_ref, w_ref, b_ref, pe_ref, o_ref):
    # x: (1, L, P) f32; w: (P, C); b: (1, C); pe: (L, C); o: (1, L, C) bf16
    x = x_ref[0]                                            # (L, P)
    acc = jnp.dot(x, w_ref[...], preferred_element_type=jnp.float32)
    o_ref[0] = (acc + b_ref[...] + pe_ref[...]).astype(o_ref.dtype)


def patch_embed_pe(patches, w, b, pe_flat):
    """patches (B, L, P) -> bf16 features (B, L, C); PE add fused in-kernel."""
    B, L, P = patches.shape
    C = w.shape[1]
    return pl.pallas_call(
        _patch_embed_pe_kernel,
        out_shape=jax.ShapeDtypeStruct((B, L, C), jnp.bfloat16),
        grid=(B,),
        in_specs=[
            pl.BlockSpec((1, L, P), lambda n: (n, 0, 0)),
            pl.BlockSpec((P, C), lambda n: (0, 0)),
            pl.BlockSpec((1, C), lambda n: (0, 0)),
            pl.BlockSpec((L, C), lambda n: (0, 0)),
        ],
        out_specs=pl.BlockSpec((1, L, C), lambda n: (n, 0, 0)),
        compiler_params=pltpu.CompilerParams(
            dimension_semantics=("parallel",)),
    )(patches, w, b, pe_flat)


# --- fused single-pass dual-softmax (whole (L,S) tile per batch element) ----

def _dual_softmax_fused_kernel(alpha_ref, f0_ref, f1_ref, out_ref, *, inv_scale):
    # alpha: (1,1) f32 SMEM; f0: (1, L, C) bf16; f1: (1, S, C) bf16;
    # out: (1, L, S) f32.
    sim = lax.dot_general(f0_ref[0], f1_ref[0], (((1,), (1,)), ((), ())),
                          preferred_element_type=jnp.float32) * inv_scale
    row_max = jnp.max(sim, axis=1, keepdims=True)            # (L, 1)
    col_max = jnp.max(sim, axis=0, keepdims=True)            # (1, S)
    e_r = jnp.exp(sim - row_max)                             # exp pass 1 (EUP)
    e_c = jnp.exp(sim - col_max)                             # exp pass 2 (EUP)
    # conf = alpha * softmax_S * softmax_L ; alpha folded into the row scale
    # so only cheap (L,1)/(1,S) divides and (L,S) VPU multiplies remain.
    row_scale = alpha_ref[0, 0] / jnp.sum(e_r, axis=1, keepdims=True)
    col_scale = 1.0 / jnp.sum(e_c, axis=0, keepdims=True)
    out_ref[0] = ((e_r * row_scale) * (e_c * col_scale)).astype(out_ref.dtype)


# --- two-pass L-tiled dual-softmax (large L*S fallback) ----------------------

def _dual_softmax_stats_kernel(f0_ref, f1_ref, row_lse_ref, col_lse_ref,
                               col_max_sc, col_sum_sc, *, inv_scale):
    # f0: (1, TL, C) bf16; f1: (1, S, C) bf16; row_lse: (1, TL, 1);
    # col_lse: (1, 1, S); scratch col_max/col_sum: (1, S) f32.
    lt = pl.program_id(1)

    @pl.when(lt == 0)
    def _():
        col_max_sc[...] = jnp.full_like(col_max_sc, -jnp.inf)
        col_sum_sc[...] = jnp.zeros_like(col_sum_sc)

    # bf16 features feed the MXU; stats math stays f32.  dot_general contracts
    # the last dims directly (no transposed copy of f1 in VMEM).
    sim = lax.dot_general(f0_ref[0], f1_ref[0], (((1,), (1,)), ((), ())),
                          preferred_element_type=jnp.float32) * inv_scale

    # logsumexp over S (softmax dim 2): complete within this L-tile -> final.
    row_max = jnp.max(sim, axis=1, keepdims=True)            # (TL, 1)
    row_sum = jnp.sum(jnp.exp(sim - row_max), axis=1, keepdims=True)
    row_lse_ref[0] = jnp.log(row_sum) + row_max

    # logsumexp over L (softmax dim 1): online accumulation across L-tiles.
    tile_cmax = jnp.max(sim, axis=0, keepdims=True)           # (1, S)
    new_cmax = jnp.maximum(col_max_sc[...], tile_cmax)
    col_sum_sc[...] = (col_sum_sc[...] * jnp.exp(col_max_sc[...] - new_cmax)
                       + jnp.sum(jnp.exp(sim - new_cmax), axis=0, keepdims=True))
    col_max_sc[...] = new_cmax

    @pl.when(lt == pl.num_programs(1) - 1)
    def _():
        col_lse_ref[0] = jnp.log(col_sum_sc[...]) + col_max_sc[...]


def _dual_softmax_conf_kernel(alpha_ref, f0_ref, f1_ref, row_lse_ref,
                              col_lse_ref, out_ref, *, inv_scale):
    # alpha: (1,1) f32 in SMEM; out: (1, TL, S) f32.
    sim = lax.dot_general(f0_ref[0], f1_ref[0], (((1,), (1,)), ((), ())),
                          preferred_element_type=jnp.float32) * inv_scale
    # softmax_L * softmax_S == exp(2*sim - lse_L - lse_S); the argument is
    # always <= 0, so a single exp pass is numerically safe and needs no divide.
    z = 2.0 * sim - row_lse_ref[0] - col_lse_ref[0]          # (TL,S)-(TL,1)-(1,S)
    out_ref[0] = (alpha_ref[0, 0] * jnp.exp(z)).astype(out_ref.dtype)


def dual_softmax_conf(feat0, feat1, alpha, temperature):
    """feat0 (N,L,C) bf16, feat1 (N,S,C) bf16, alpha (1,1) f32 -> conf (N,L,S) f32.

    conf = alpha * softmax(sim, axis=L) * softmax(sim, axis=S) with
    sim = (feat0/sqrt(C)) @ (feat1/sqrt(C))^T / temperature.

    Small/medium L*S: fused single-pass kernel (sim computed once, two exp
    passes, one launch).  Large L*S: two L-tiled passes — pass 1 emits row /
    column logsumexp stats (column stats accumulated over the 'arbitrary'
    L-tile axis), pass 2 recomputes sim per tile (K=C is tiny) and writes conf.
    """
    N, L, C = feat0.shape
    S = feat1.shape[1]
    inv_scale = 1.0 / (C * temperature)

    # TODO(synk): optional mask0/mask1 masked_fill(-INF) path not implemented
    # (no masks in the synthetic data dict).

    fused_bytes = 4 * C * (L + S) + 20 * L * S   # feats(dbl) + out(dbl) + temps
    if fused_bytes <= FUSED_VMEM_BUDGET:
        return pl.pallas_call(
            functools.partial(_dual_softmax_fused_kernel, inv_scale=inv_scale),
            out_shape=jax.ShapeDtypeStruct((N, L, S), jnp.float32),
            grid=(N,),
            in_specs=[
                pl.BlockSpec(memory_space=pltpu.MemorySpace.SMEM),  # blend scalar
                pl.BlockSpec((1, L, C), lambda n: (n, 0, 0)),
                pl.BlockSpec((1, S, C), lambda n: (n, 0, 0)),
            ],
            out_specs=pl.BlockSpec((1, L, S), lambda n: (n, 0, 0)),
            compiler_params=pltpu.CompilerParams(
                dimension_semantics=("parallel",)),
        )(alpha, feat0, feat1)

    # ------------------------- tiled fallback --------------------------------
    TL = _pick_l_tile(L)
    n_lt = L // TL
    step_bytes = TL * C * 2 + S * C * 2 + 3 * TL * S * 4     # rough VMEM estimate

    # --- pass 1: per-row (over S) + per-column (over L) logsumexp ------------
    row_lse, col_lse = pl.pallas_call(
        functools.partial(_dual_softmax_stats_kernel, inv_scale=inv_scale),
        out_shape=(jax.ShapeDtypeStruct((N, L, 1), jnp.float32),
                   jax.ShapeDtypeStruct((N, 1, S), jnp.float32)),
        grid=(N, n_lt),
        in_specs=[
            pl.BlockSpec((1, TL, C), lambda n, lt: (n, lt, 0)),
            pl.BlockSpec((1, S, C), lambda n, lt: (n, 0, 0)),
        ],
        out_specs=(
            pl.BlockSpec((1, TL, 1), lambda n, lt: (n, lt, 0)),
            pl.BlockSpec((1, 1, S), lambda n, lt: (n, 0, 0)),
        ),
        scratch_shapes=[pltpu.VMEM((1, S), jnp.float32),
                        pltpu.VMEM((1, S), jnp.float32)],
        compiler_params=pltpu.CompilerParams(
            dimension_semantics=("parallel", "arbitrary"),
            vmem_limit_bytes=_maybe_vmem_limit(step_bytes)),
    )(feat0, feat1)

    # --- pass 2: conf tiles (lane-dense (TL, S) stores at real sizes) --------
    conf = pl.pallas_call(
        functools.partial(_dual_softmax_conf_kernel, inv_scale=inv_scale),
        out_shape=jax.ShapeDtypeStruct((N, L, S), jnp.float32),
        grid=(N, n_lt),
        in_specs=[
            pl.BlockSpec(memory_space=pltpu.MemorySpace.SMEM),  # blend scalar
            pl.BlockSpec((1, TL, C), lambda n, lt: (n, lt, 0)),
            pl.BlockSpec((1, S, C), lambda n, lt: (n, 0, 0)),
            pl.BlockSpec((1, TL, 1), lambda n, lt: (n, lt, 0)),
            pl.BlockSpec((1, 1, S), lambda n, lt: (n, 0, 0)),
        ],
        out_specs=pl.BlockSpec((1, TL, S), lambda n, lt: (n, lt, 0)),
        compiler_params=pltpu.CompilerParams(
            dimension_semantics=("parallel", "parallel"),
            vmem_limit_bytes=_maybe_vmem_limit(step_bytes)),
    )(alpha, feat0, feat1, row_lse, col_lse)
    return conf


# ============================ JAX glue ======================================

def position_encoding_sine(d_model, h, w, temp_bug_fix=True):
    """LoFTR-style sinusoidal PE, returns (d_model, h, w)."""
    y_pos = jnp.cumsum(jnp.ones((h, w), jnp.float32), axis=0)
    x_pos = jnp.cumsum(jnp.ones((h, w), jnp.float32), axis=1)
    half = d_model // 2
    idx = jnp.arange(0, half, 2, dtype=jnp.float32)
    if temp_bug_fix:
        div_term = jnp.exp(idx * (-math.log(10000.0) / half))
    else:
        div_term = jnp.exp(idx * (-math.log(10000.0) / (half // 2)))
    div_term = div_term[:, None, None]                      # (half/2, 1, 1)
    pe = jnp.zeros((d_model, h, w), jnp.float32)
    pe = pe.at[0::4].set(jnp.sin(x_pos[None] * div_term))
    pe = pe.at[1::4].set(jnp.cos(x_pos[None] * div_term))
    pe = pe.at[2::4].set(jnp.sin(y_pos[None] * div_term))
    pe = pe.at[3::4].set(jnp.cos(y_pos[None] * div_term))
    return pe


def extract_patches(img):
    """(B,1,H,W) NCHW -> (B, L, P) with P = PATCH*PATCH non-overlapping pixels."""
    B, _, H, W = img.shape
    x = img.reshape(B, 1, H // PATCH, PATCH, W // PATCH, PATCH)
    x = x.transpose(0, 2, 4, 1, 3, 5)
    return x.reshape(B, (H // PATCH) * (W // PATCH), PATCH * PATCH)


def init_params(key):
    k1, k2 = jax.random.split(key)
    P = PATCH * PATCH
    w_embed = jax.random.normal(k1, (P, D_MODEL), jnp.float32) / math.sqrt(P)
    b_embed = jax.random.normal(k2, (1, D_MODEL), jnp.float32) * 0.01
    update_weight = jnp.full((N_ITER,), 0.5, jnp.float32)    # nn.Parameter init
    return {"w_embed": w_embed, "b_embed": b_embed,
            "update_weight": update_weight}


def threedsam_forward(data, params):
    img0, img1 = data["image0"], data["image1"]              # (N,1,H,W)
    N, _, H, W = img0.shape
    h, w = H // PATCH, W // PATCH
    L = S = h * w

    # TODO(synk): ResNet-FPN backbone + LocalFeatureTransformer init_attention
    # are undefined in the reference; a fused patch-embed + sinusoidal-PE
    # Pallas kernel stands in for the 1/8-resolution coarse features.
    # hw0_i == hw1_i, so both images go through one concatenated call
    # (mirrors the torch.cat backbone path of the reference).
    patches = extract_patches(jnp.concatenate([img0, img1], axis=0))   # (2N,L,P)
    pe_flat = position_encoding_sine(D_MODEL, h, w).reshape(D_MODEL, -1).T  # (L,C)
    feats = patch_embed_pe(patches, params["w_embed"], params["b_embed"], pe_flat)
    feat0_8, feat1_8 = feats[:N], feats[N:]                  # bf16 (N,L,C)

    # get_conf_matrix + the update_conf_matrix loop:
    #   conf_0     = softmax_L(sim) * softmax_S(sim)
    #   conf_{i+1} = w_i * conf_cur_i + (1 - w_i) * conf_i
    # TODO(synk): get_match_mask / iterative_optimization are undefined, so the
    # features (hence conf_cur) are identical every iteration and the blend loop
    # collapses to the scalar coefficient alpha (== 1.0), applied once inside
    # the conf kernel instead of recomputing the full dual-softmax 3x.
    alpha = jnp.float32(1.0)
    for n_iter in range(N_ITER):
        w_i = params["update_weight"][n_iter]
        alpha = w_i + (1.0 - w_i) * alpha
    alpha = jnp.reshape(alpha, (1, 1)).astype(jnp.float32)

    conf = dual_softmax_conf(feat0_8, feat1_8, alpha, TEMPERATURE)

    # TODO(synk): get_coarse_match / fine_preprocess / threedsam_fine /
    # fine_matching are undefined submodules; not translatable from given code.
    data_out = dict(data)
    data_out.update({
        "bs": N, "hw0_i": (H, W), "hw1_i": (H, W),
        "hw0_c_8": (h, w), "hw1_c_8": (h, w),
        "conf_matrix": conf,
        "feat0_8": feat0_8, "feat1_8": feat1_8,
        "alpha": alpha,
    })
    return data_out


def _reference_conf(feat0_bf16, feat1_bf16, alpha, temperature):
    """Pure-JAX reference of the dual-softmax blend (same bf16 features)."""
    f0 = feat0_bf16.astype(jnp.float32)
    f1 = feat1_bf16.astype(jnp.float32)
    C = f0.shape[-1]
    sim = jnp.einsum("nlc,nsc->nls", f0, f1,
                     precision=lax.Precision.HIGHEST) / (C * temperature)
    conf = jax.nn.softmax(sim, axis=1) * jax.nn.softmax(sim, axis=2)
    return jnp.reshape(alpha, ()) * conf


def _check_case(key, N, H, W, params):
    k0, k1 = jax.random.split(key)
    data = {
        "image0": jax.random.normal(k0, (N, 1, H, W), jnp.float32),
        "image1": jax.random.normal(k1, (N, 1, H, W), jnp.float32),
    }
    out = threedsam_forward(data, params)
    conf = jax.block_until_ready(out["conf_matrix"])

    L = (H // PATCH) * (W // PATCH)
    assert conf.shape == (N, L, L)
    assert bool(jnp.all(jnp.isfinite(conf)))
    # dual-softmax sanity: each entry is a product of two softmax values.
    assert bool(jnp.all(conf >= 0.0)) and bool(jnp.all(conf <= 1.0 + 1e-5))
    # numerical check against a pure-JAX reference on the same bf16 features.
    ref = _reference_conf(out["feat0_8"], out["feat1_8"], out["alpha"],
                          TEMPERATURE)
    max_err = float(jnp.max(jnp.abs(conf - ref)))
    assert max_err < 1e-3, f"max |conf - ref| = {max_err}"


if __name__ == "__main__":
    key = jax.random.PRNGKey(0)
    k_small, k_large, k_par = jax.random.split(key, 3)
    params = init_params(k_par)

    # small case -> fused single-pass kernel path
    _check_case(k_small, N=2, H=64, W=64, params=params)
    # larger case -> two-pass L-tiled kernel path (L = S = 1024, TL = 256)
    _check_case(k_large, N=1, H=256, W=256, params=params)

    print("KERNEL_OK")
</pallas_src>

<mosaic_0001>
module attributes {stable_mosaic.version = 11 : i64} {
  func.func @_patch_embed_pe_kernel(%arg0: i32, %arg1: memref<1x64x64xf32, #tpu.memory_space<vmem>>, %arg2: memref<64x32xf32, #tpu.memory_space<vmem>>, %arg3: memref<1x32xf32, #tpu.memory_space<vmem>>, %arg4: memref<64x32xf32, #tpu.memory_space<vmem>>, %arg5: memref<1x64x32xbf16, #tpu.memory_space<vmem>>) attributes {dimension_semantics = [#tpu.dimension_semantics<parallel>], iteration_bounds = array<i64: 4>, scalar_prefetch = 0 : i64, scratch_operands = 0 : i64, tpu.core_type = #tpu.core_type<tc>, window_params = [{transform_indices = @transform_0, window_bounds = array<i64: 1, 64, 64>}, {pipeline_mode = #tpu.pipeline_mode<synchronous>, transform_indices = @transform_1, window_bounds = array<i64: 64, 32>}, {pipeline_mode = #tpu.pipeline_mode<synchronous>, transform_indices = @transform_2, window_bounds = array<i64: 1, 32>}, {pipeline_mode = #tpu.pipeline_mode<synchronous>, transform_indices = @transform_3, window_bounds = array<i64: 64, 32>}, {transform_indices = @transform_4, window_bounds = array<i64: 1, 64, 32>}]} {
    %c0 = arith.constant 0 : index
    %c0_0 = arith.constant 0 : index
    %c0_1 = arith.constant 0 : index
    %0 = vector.load %arg1[%c0, %c0_0, %c0_1] : memref<1x64x64xf32, #tpu.memory_space<vmem>>, vector<1x64x64xf32>
    %1 = vector.shape_cast %0 : vector<1x64x64xf32> to vector<64x64xf32>
    %c0_2 = arith.constant 0 : index
    %c0_3 = arith.constant 0 : index
    %2 = vector.load %arg2[%c0_2, %c0_3] : memref<64x32xf32, #tpu.memory_space<vmem>>, vector<64x32xf32>
    %cst = arith.constant dense<0.000000e+00> : vector<64x32xf32>
    %3 = tpu.matmul %1, %2, %cst {dimension_numbers = #tpu.dot_dimension_numbers<[1], [0], [0], [1], [0, 0, 1, 1], [], []>} : vector<64x64xf32>, vector<64x32xf32>, vector<64x32xf32> -> vector<64x32xf32>
    %c0_4 = arith.constant 0 : index
    %c0_5 = arith.constant 0 : index
    %4 = vector.load %arg3[%c0_4, %c0_5] : memref<1x32xf32, #tpu.memory_space<vmem>>, vector<1x32xf32>
    %5 = vector.broadcast %4 : vector<1x32xf32> to vector<64x32xf32>
    %6 = arith.addf %3, %5 : vector<64x32xf32>
    %c0_6 = arith.constant 0 : index
    %c0_7 = arith.constant 0 : index
    %7 = vector.load %arg4[%c0_6, %c0_7] : memref<64x32xf32, #tpu.memory_space<vmem>>, vector<64x32xf32>
    %8 = arith.addf %6, %7 : vector<64x32xf32>
    %9 = arith.truncf %8 : vector<64x32xf32> to vector<64x32xbf16>
    %c0_8 = arith.constant 0 : index
    %c0_9 = arith.constant 0 : index
    %c0_10 = arith.constant 0 : index
    %10 = vector.load %arg5[%c0_8, %c0_9, %c0_10] : memref<1x64x32xbf16, #tpu.memory_space<vmem>>, vector<1x64x32xbf16>
    %11 = vector.shape_cast %10 : vector<1x64x32xbf16> to vector<64x32xbf16>
    %12 = vector.shape_cast %9 : vector<64x32xbf16> to vector<1x64x32xbf16>
    tpu.vector_store %arg5[%c0_8, %c0_9, %c0_10], %12 {strides = array<i32>} : memref<1x64x32xbf16, #tpu.memory_space<vmem>>, vector<1x64x32xbf16>,
    return
  }
  func.func @transform_0(%arg0: i32) -> (i32, i32, i32) {
    %c0_i32 = arith.constant 0 : i32
    %c0_i32_0 = arith.constant 0 : i32
    %c0_i32_1 = arith.constant 0 : i32
    return %arg0, %c0_i32, %c0_i32_0 : i32, i32, i32
  }
  func.func @transform_1(%arg0: i32) -> (i32, i32) {
    %c0_i32 = arith.constant 0 : i32
    %c0_i32_0 = arith.constant 0 : i32
    %c0_i32_1 = arith.constant 0 : i32
    return %c0_i32, %c0_i32_0 : i32, i32
  }
  func.func @transform_2(%arg0: i32) -> (i32, i32) {
    %c0_i32 = arith.constant 0 : i32
    %c0_i32_0 = arith.constant 0 : i32
    %c0_i32_1 = arith.constant 0 : i32
    return %c0_i32, %c0_i32_0 : i32, i32
  }
  func.func @transform_3(%arg0: i32) -> (i32, i32) {
    %c0_i32 = arith.constant 0 : i32
    %c0_i32_0 = arith.constant 0 : i32
    %c0_i32_1 = arith.constant 0 : i32
    return %c0_i32, %c0_i32_0 : i32, i32
  }
  func.func @transform_4(%arg0: i32) -> (i32, i32, i32) {
    %c0_i32 = arith.constant 0 : i32
    %c0_i32_0 = arith.constant 0 : i32
    %c0_i32_1 = arith.constant 0 : i32
    return %arg0, %c0_i32, %c0_i32_0 : i32, i32, i32
  }
}

</mosaic_0001>

<bundles_post_ra>
// kernel: tpu_custom_call.1
= control target key start
LH: loop header
LB: loop body
LE: loop exit
PB: predicated region body
PF: predicated region fallthrough
CT: control target
= control target key end

     0   :  { %9 = vsyncpa [#allocation3], 0  ;;  %s932_s0 = inlined_call_operand.hbm [shape: f32[4,64,64], index: 0, kind: input, shape index: {}]   ;;  %s933_s1 = inlined_call_operand.vmem [shape: f32[64,32], index: 1, kind: input, shape index: {}]   ;;  %s934_s2 = inlined_call_operand.vmem [shape: f32[1,32], index: 2, kind: input, shape index: {}]   ;;  %s935_s3 = inlined_call_operand.vmem [shape: f32[64,32], index: 3, kind: input, shape index: {}]   ;;  %s936_s4 = inlined_call_operand.vmem [shape: bf16[4,64,32], index: 4, kind: output, shape index: {}]  }
   0x1   :  { %11 = vsyncpa [#allocation3 + $0x1], 0  ;;  %s737_s15 = smov 0   ;;  %s739_s16 = smov 0  }
   0x2   :  { %s741_s17 = smov 0   ;;  %s743_s18 = smov 0  }
   0x3 LB: > { %s756_s19 = sadd.s32 4294967295, %s707_s18   ;;  %s759_s20 = sadd.s32 1, %s707_s18   ;;  %s707_s18 = sphi %s743_s18, %s943_s18   ;;  %s703_s17 = sphi %s741_s17, %s942_s17   ;;  %s699_s16 = sphi %s739_s16, %s941_s16   ;;  %s695_s15 = sphi %s737_s15, %s940_s15  }
   0x4   : > { %s21_s21 = ssub.s32 %s707_s18, %s759_s20  ;;  %s24_s22 = sadd.s32 1, %s703_s17 }
   0x5   : > { %p22_p0 = scmp.eq.s32.totalorder %s21_s21, 0  ;;  %p31_p1 = scmp.ne.s32.totalorder %s703_s17, %s699_s16 }
   0x6   : > { %p32_p2 = scmp.eq.s32.totalorder %s707_s18, 0  ;;  %p37_p3 = scmp.ne.s32.totalorder %s699_s16, %s695_s15 }
   0x7   : > { %s769_s23 = scalar_select %p22_p0, %s703_s17, %s24_s22  }
   0x8   : > { %p33_p4 = por %p32_p2, %p31_p1  ;;  %p38_p5 = scmp.eq.s32.totalorder %s756_s19, 0 }
   0x9   : > { %p608_p6 = scmp.lt.s32.totalorder %s707_s18, 4  ;;  %s159_s25 = sand.u32 1, %s703_s17  }
   0xa   : > { %p773_p7 = por %p38_p5, %p37_p3  ;;  %s498_s26 = sshll.u32 %s159_s25, 6 }
   0xb   : > { %s524_s27 = sshll.u32 %s707_s18, 10  ;;  %s163_s5 = scalar_lea.vmem [#allocation2], %s498_s26 }
   0xc   : > { %s782_s30 = scalar_lea.hbm %s932_s0, %s524_s27  ;;  %s170_s6 = sshll.u32 %s163_s5, 4  ;;  %s784_s6 = int_to_ptr.vmem [resolvable:$true] %s170_s6 }
   0xd   : > { %p786_p8 = pnand %p608_p6, %p33_p4  ;;  %s791_s8 = scalar_lea.sflag [#allocation3], %s159_s25 }
   0xe   : > { %s643_s9 = scalar_lea.hbm %s782_s30, 1024  ;;  %s648_s12 = scalar_lea.hbm %s932_s0, 4096 }
   0xf   : > { %p644_p10 = scmp.ne.s32.totalorder %s782_s30, %s643_s9  ;;  %p645_p11 = pneg %p786_p8 }
  0x10   : > { %p649_p0 = scmp.lt.u32.totalorder %s782_s30, %s932_s0  ;;  %p650_p1 = scmp.lt.u32.totalorder %s648_s12, %s643_s9 }
  0x11   : > { %p646_p12 = pnand %p645_p11, %p644_p10  ;;  %p652_p3 = scmp.lt.u32.totalorder %s643_s9, %s782_s30 }
  0x12   : > { %p651_p2 = por %p650_p1, %p649_p0 }
  0x13   : > { %p647_p13 = pneg %p646_p12 }
  0x14   : > { %p653_p4 = por %p652_p3, %p651_p2 }
  0x16   : > { %p654_p5 = pnand %p653_p4, %p647_p13 }
  0x18   : > { %657 = shalt.err (!%p654_p5)
}
  0x19   : > { %s658_s15 = scalar_lea.vmem %s784_s6, 1024  ;;  %s709_s21 = smov [#allocation2]  }
  0x1a   : > { %p659_p6 = scmp.ne.s32.totalorder %s784_s6, %s658_s15  ;;  %s663_s22 = sshll.u32 %s709_s21, 4  ;;  %s664_s22 = int_to_ptr.vmem [resolvable:$false] %s663_s22 }
  0x1b   : > { %s665_s25 = scalar_lea.vmem %s664_s22, 2048  ;;  %p666_p9 = scmp.lt.s32.totalorder %s784_s6, %s664_s22 }
  0x1c   : > { %p661_p10 = pnand %p659_p6, %p645_p11  ;;  %p667_p0 = scmp.lt.s32.totalorder %s665_s25, %s658_s15 }
  0x1e   : > { %p662_p12 = pneg %p661_p10  ;;  %p668_p1 = por %p667_p0, %p666_p9 }
  0x20   : > { %p669_p2 = pnand %p668_p1, %p662_p12 }
  0x22   : > { %672 = shalt.err (!%p669_p2)
}
  0x23   : > { %s710_s26 = smov 128   ;;  %s711_s27 = smov 8  }
  0x24   : > { %607 = dma.hbm_to_vmem [thread:$0]  (!%p786_p8), %s782_s30, 1024, %s784_s6, %s791_s8, %s710_s26, %s710_s26, %s711_s27  }
  0x25   : > { %p178_p11 = scmp.lt.s32.totalorder %s707_s18, 5  ;;  %p939_p13 = scmp.ge.s32.totalorder %s707_s18, 1 }
  0x27   : > { %p179_p3 = pnand %p939_p13, %p178_p11 }
  0x28   : > { %s184_s28 = sand.u32 (!%p179_p3), 1, %s699_s16  }
  0x29   : > { %182 = sbr.rel (%p179_p3) target bundleno = 292 (0x124), region = 36  ;;  %s502_s29 = sshll.u32 (!%p179_p3), %s184_s28, 6 }
  0x2a   : > { %s185_s5 = scalar_lea.sflag (!%p179_p3), [#allocation3], %s184_s28  ;;  %s823_s9 = scalar_lea.vmem (!%p179_p3), [#allocation2], %s502_s29 }
  0x30   : > { %690 = dma.done.wait (%p773_p7), %s185_s5, 1024  }
  0x31   : > { %692 = vsyncadd (%p773_p7), %s185_s5, 4294966272  ;;  %v226_v0 = vld [vmem:[%s933_s1] sm:$0xff]  ;;  %v227_v1 = vld [vmem:[%s933_s1 + $0x8] sm:$0xff]  ;;  %vm241_vm0 = vcmask 523264   ;;  %p213_p7 = scmp.lt.s32.totalorder %s756_s19, 3  ;;  %vm419_vm1 = vcmask 257024  }
  0x32   : > { %v228_v2 = vld [vmem:[%s933_s1 + $0x10] sm:$0xff]  ;;  %v578_v3 = vpack.c.bf16 %v227_v1, %v226_v0  ;;  %v229_v4 = vld [vmem:[%s933_s1 + $0x18] sm:$0xff]  ;;  %v230_v6 = vld [vmem:[%s933_s1 + $0x20] sm:$0xff] }
  0x33   : > { %v582_v5 = vpack.c.bf16 %v229_v4, %v228_v2  ;;  %v231_v7 = vld [vmem:[%s933_s1 + $0x28] sm:$0xff]  ;;  %v218_v8 = vld [vmem:[%s823_s9] sm:$0xff]  ;;  %v232_v11 = vld [vmem:[%s933_s1 + $0x30] sm:$0xff]  ;;  %s945_s19 = smov (!%p213_p7, %s756_s19), 3 }
  0x34   : > { %579 = vmatprep.subr.bf16.mxu0 %v578_v3  ;;  %594 = vmatprep.subr.bf16.mxu1 %v578_v3  ;;  %v222_v9 = vld [vmem:[%s823_s9 + $0x20] sm:$0xff]  ;;  %v586_v10 = vpack.c.bf16 %v231_v7, %v230_v6  ;;  %v233_v12 = vld [vmem:[%s933_s1 + $0x38] sm:$0xff]  ;;  %v219_v14 = vld [vmem:[%s823_s9 + $0x8] sm:$0xff] }
  0x35   : > { %581 = vmatpush3.bf16.msra.mxu0 %v578_v3  ;;  %598 = vmatpush3.bf16.msra.mxu1 %v578_v3  ;;  %v590_v13 = vpack.c.bf16 %v233_v12, %v232_v11  ;;  %v223_v15 = vld [vmem:[%s823_s9 + $0x28] sm:$0xff]  ;;  %v220_v16 = vld [vmem:[%s823_s9 + $0x10] sm:$0xff]  ;;  %v221_v18 = vld [vmem:[%s823_s9 + $0x18] sm:$0xff] }
  0x36   : > { %583 = vmatprep.subr.bf16.mxu0 %v582_v5  ;;  %595 = vmatprep.subr.bf16.mxu1 %v582_v5  ;;  %v224_v17 = vld [vmem:[%s823_s9 + $0x30] sm:$0xff]  ;;  %v225_v19 = vld [vmem:[%s823_s9 + $0x38] sm:$0xff]  ;;  %v505_v20 = vld [vmem:[%s934_s2] ss:$0 sm:$0xff]  ;;  %s525_s9 = sshll.u32 %s945_s19, 5 }
  0x37   : > { %566 = vmatprep.mubr.msk.f32.mxu0 %vm241_vm0, %v218_v8  ;;  %572 = vmatprep.mubr.msk.f32.mxu1 %vm241_vm0, %v222_v9  ;;  %v372_v22 = vld [vmem:[%s935_s3 + $0x8] sm:$0xff]  ;;  %v371_v28 = vld [vmem:[%s935_s3] sm:$0xff]  ;;  %s889_s19 = scalar_lea.vmem %s936_s4, %s525_s9  ;;  %v374_v38 = vld [vmem:[%s935_s3 + $0x18] sm:$0xff] }
  0x38   : > { %v376_v24 = vld [vmem:[%s935_s3 + $0x28] sm:$0xff]  ;;  %v375_v30 = vld [vmem:[%s935_s3 + $0x20] sm:$0xff]  ;;  %v378_v40 = vld [vmem:[%s935_s3 + $0x38] sm:$0xff] }
  0x39   : > { %585 = vmatpush3.bf16.msra.mxu0 %v582_v5  ;;  %599 = vmatpush3.bf16.msra.mxu1 %v582_v5  ;;  %v373_v46 = vld [vmem:[%s935_s3 + $0x10] sm:$0xff] }
  0x3a   : > { %587 = vmatprep.subr.bf16.mxu0 %v586_v10  ;;  %596 = vmatprep.subr.bf16.mxu1 %v586_v10  ;;  %v377_v48 = vld [vmem:[%s935_s3 + $0x30] sm:$0xff] }
  0x3d   : > { %589 = vmatpush3.bf16.msra.mxu0 %v586_v10  ;;  %600 = vmatpush3.bf16.msra.mxu1 %v586_v10 }
  0x3e   : > { %591 = vmatprep.subr.bf16.mxu0 %v590_v13  ;;  %597 = vmatprep.subr.bf16.mxu1 %v590_v13 }
  0x41   : > { %593 = vmatpush3.bf16.msra.mxu0 %v590_v13  ;;  %601 = vmatpush3.bf16.msra.mxu1 %v590_v13 }
  0x44   : > { %567 = vmatmul.mubr.msk.f32.vlgmr.msra.gmra.mrb[0].mxu0 %vm241_vm0, %v219_v14  ;;  %573 = vmatmul.mubr.msk.f32.vlgmr.msra.gmra.mrb[0].mxu1 %vm241_vm0, %v223_v15 }
  0x45   : > { %569 = vmatprep.mubr.msk.f32.mxu0 %vm241_vm0, %v220_v16  ;;  %575 = vmatprep.mubr.msk.f32.mxu1 %vm241_vm0, %v224_v17 }
  0x48   : > { %570 = vmatmul.mubr.msk.f32.gmra.mrb[2].mxu0 %vm241_vm0, %v221_v18  ;;  %576 = vmatmul.mubr.msk.f32.gmra.mrb[2].mxu1 %vm241_vm0, %v225_v19 }
 0x117   : > { %v568_v21 = vpop.f32.mrb[0].mxu0  ;;  %v574_v23 = vpop.f32.mrb[0].mxu1 }
 0x118   : > { %v338_v25 = vadd.f32 %v568_v21, %v505_v20  ;;  %v358_v26 = vadd.f32 %v574_v23, %v505_v20  ;;  %v332_v27 = vpop.f32.mrb[1].mxu0  ;;  %v352_v29 = vpop.f32.mrb[1].mxu1 }
 0x119   : > { %v333_v31 = vadd.f32 %v505_v20, %v332_v27  ;;  %v353_v32 = vadd.f32 %v505_v20, %v352_v29 }
 0x11a   : > { %v380_v33 = vadd.f32 %v372_v22, %v338_v25  ;;  %v384_v34 = vadd.f32 %v376_v24, %v358_v26 }
 0x11b   : > { %v379_v35 = vadd.f32 %v371_v28, %v333_v31  ;;  %v383_v36 = vadd.f32 %v375_v30, %v353_v32  ;;  %v571_v37 = vpop.f32.mrb[2].mxu0  ;;  %v577_v39 = vpop.f32.mrb[2].mxu1 }
 0x11c   : > { %v527_v41 = vpack.c.bf16 %v380_v33, %v380_v33  ;;  %v531_v42 = vpack.c.bf16 %v384_v34, %v384_v34  ;;  %v348_v43 = vadd.f32 %v571_v37, %v505_v20  ;;  %v368_v44 = vadd.f32 %v577_v39, %v505_v20  ;;  %v342_v45 = vpop.f32.mrb[3].mxu0  ;;  %v362_v47 = vpop.f32.mrb[3].mxu1 }
 0x11d   : > { %v526_v49 = vpack.c.bf16 %v379_v35, %v379_v35  ;;  %v530_v50 = vpack.c.bf16 %v383_v36, %v383_v36  ;;  %v343_v51 = vadd.f32 %v505_v20, %v342_v45  ;;  %v363_v52 = vadd.f32 %v505_v20, %v362_v47 }
 0x11e   : > { %421 = vst.msk [vmem:[%s889_s19 + $0x4] sm:$0xf] %vm419_vm1, %v527_v41  ;;  %425 = vst.msk [vmem:[%s889_s19 + $0x14] sm:$0xf] %vm419_vm1, %v531_v42  ;;  %v382_v53 = vadd.f32 %v374_v38, %v348_v43  ;;  %v386_v54 = vadd.f32 %v378_v40, %v368_v44 }
 0x11f   : > { %420 = vst.msk [vmem:[%s889_s19] sm:$0xf] %vm419_vm1, %v526_v49  ;;  %424 = vst.msk [vmem:[%s889_s19 + $0x10] sm:$0xf] %vm419_vm1, %v530_v50  ;;  %v381_v55 = vadd.f32 %v373_v46, %v343_v51  ;;  %v385_v56 = vadd.f32 %v377_v48, %v363_v52 }
 0x120   : > { %v529_v57 = vpack.c.bf16 %v382_v53, %v382_v53  ;;  %v533_v58 = vpack.c.bf16 %v386_v54, %v386_v54 }
 0x121   : > { %v528_v59 = vpack.c.bf16 %v381_v55, %v381_v55  ;;  %v532_v60 = vpack.c.bf16 %v385_v56, %v385_v56 }
 0x122   : > { %423 = vst.msk [vmem:[%s889_s19 + $0xc] sm:$0xf] %vm419_vm1, %v529_v57  ;;  %427 = vst.msk [vmem:[%s889_s19 + $0x1c] sm:$0xf] %vm419_vm1, %v533_v58 }
 0x123   : > { %422 = vst.msk [vmem:[%s889_s19 + $0x8] sm:$0xf] %vm419_vm1, %v528_v59  ;;  %426 = vst.msk [vmem:[%s889_s19 + $0x18] sm:$0xf] %vm419_vm1, %v532_v60 }
 0x124 PF: > { %p14_p8 = scmp.ge.s32.totalorder %s759_s20, 6   ;;  %s940_s15 = smov %s699_s16 }
 0x125   : > { %s941_s16 = smov %s703_s17  ;;  %s942_s17 = smov %s769_s23 }
 0x126   : > { %s943_s18 = smov %s759_s20  ;;  %16 = sbr.rel (!%p14_p8) target bundleno = 3 (0x3), region = 76 }
 0x12d   :  { %449 = vsyncpa [#allocation3], 1 }
 0x12e   :  { %451 = vsyncpa [#allocation3 + $0x1], 1 }

</bundles_post_ra>
